<compile_context>
chip_gen: v7x
topology: tpu7x:2x2x1
jax: 0.10.0
libtpu: 0.0.40
codegen_flags: <defaults>
</compile_context>

<pallas_src>
import functools

import jax
import jax.numpy as jnp
from jax import lax
from jax.experimental import pallas as pl
from jax.experimental.pallas import tpu as pltpu

_MIB = 1024 * 1024
_FOLD_MAX_K = 1024   # fold taps into the contraction when kt*kh*kw*Cin <= this


def _round_up(x, m):
    return (x + m - 1) // m * m


@functools.lru_cache(maxsize=None)
def _gen_params():
    """Generation-aware (cout_tile, vmem_limit_bytes)."""
    kind = ""
    try:
        kind = jax.devices()[0].device_kind.lower()
    except Exception:
        pass
    vmem_cap = None
    try:
        vmem_cap = int(pltpu.get_tpu_info().vmem_capacity_bytes)
    except Exception:
        vmem_cap = None
    is_v5e = ("v5e" in kind) or ("v5 lite" in kind) or ("v5litepod" in kind)
    is_v7 = "v7" in kind
    if vmem_cap is None:
        vmem_cap = (64 if is_v7 else 128) * _MIB
    # Leave headroom for Mosaic internal scratch / compiler spill buffers.
    vmem_limit = max(32 * _MIB, min(vmem_cap - 16 * _MIB, 100 * _MIB))
    # v5e MXU is 128x128 -> a 256-wide Cout tile buys nothing; v6e/v7x want 256.
    cout_tile = 128 if is_v5e else 256
    return cout_tile, vmem_limit


def _choose_chunk_rows(h_out, w_r, target_rows=128):
    """Largest divisor hc of h_out with hc*w_r <= ~target_rows (at least 1)."""
    hc_max = max(1, target_rows // w_r)
    hc = 1
    for d in range(1, h_out + 1):
        if d <= hc_max and h_out % d == 0:
            hc = d
    return hc


# ----------------------------------------------------------------------------
# normalize() — exact port of the PyTorch helper (used on the weight only)
# ----------------------------------------------------------------------------
def normalize(x, dim=None, eps=1e-4):
    if dim is None:
        dim = tuple(range(1, x.ndim))
    x_f32 = x.astype(jnp.float32)
    norm = jnp.sqrt(jnp.sum(x_f32 * x_f32, axis=dim, keepdims=True))
    # torch.add(eps, norm, alpha=(norm.numel() / x.numel()) ** 0.5)
    alpha = (norm.size / x.size) ** 0.5
    norm = eps + alpha * norm
    return (x_f32 / norm).astype(x.dtype)


# ----------------------------------------------------------------------------
# FOLD-path kernel: one grid step = (batch, output frame, Cout tile).
#   col_ref : (1, 1, H_out, W_r, K_p)    im2col'd activations (bf16, VMEM)
#   w_ref   : (K_p, Cout_p|Cout_t)       packed weight (resident or per-tile)
#   o_ref   : (1, 1, H_out, W_r, Cout_t) output tile
# Single full-K matmul per H-row chunk, stored straight into o_ref.
# ----------------------------------------------------------------------------
def _fold_kernel(col_ref, w_ref, o_ref, *, hc, n_chunks, w_r, k_p, cout_t,
                 w_sliced):
    chunk_m = hc * w_r
    if w_sliced:
        col0 = pl.multiple_of(pl.program_id(2) * cout_t, cout_t)
        rhs = w_ref[:, pl.ds(col0, cout_t)]
    else:
        rhs = w_ref[...]

    def chunk_body(c, carry):
        row0 = c * hc
        lhs = col_ref[0, 0, pl.ds(row0, hc), :, :].reshape(chunk_m, k_p)
        out = jnp.dot(lhs, rhs, preferred_element_type=jnp.float32)
        o_ref[0, 0, pl.ds(row0, hc), :, :] = (
            out.reshape(hc, w_r, cout_t).astype(o_ref.dtype))
        return carry

    lax.fori_loop(0, n_chunks, chunk_body, 0)


def _fold_pallas(col, w2, *, out_dtype):
    n, t_out, h_out, w_r, k_p = col.shape
    k_p_w, cout_p = w2.shape
    assert k_p_w == k_p
    assert w_r % 8 == 0 and k_p % 128 == 0 and cout_p % 128 == 0

    cout_tile, vmem_limit = _gen_params()
    isz = col.dtype.itemsize
    osz = jnp.dtype(out_dtype).itemsize
    wsz = w2.dtype.itemsize

    chosen = None
    for cout_t in sorted({min(cout_tile, cout_p), 128}, reverse=True):
        if cout_p % cout_t:
            continue
        n_j = cout_p // cout_t
        hc = _choose_chunk_rows(h_out, w_r, target_rows=256)
        chunk_m = hc * w_r
        w_bytes_full = k_p * cout_p * wsz
        w_resident = 2 * w_bytes_full <= vmem_limit // 3
        w_block_bytes = w_bytes_full if w_resident else k_p * cout_t * wsz
        est = (2 * h_out * w_r * k_p * isz            # col block (double buffered)
               + 2 * w_block_bytes                    # weight
               + 2 * h_out * w_r * cout_t * osz       # output tile
               + 3 * chunk_m * cout_t * 4             # f32 transients / spill slack
               + 2 * _MIB)                            # Mosaic internal scratch
        if est <= vmem_limit:
            chosen = (cout_t, n_j, hc, chunk_m, w_resident)
            break
    if chosen is None:
        # TODO(synk): add H-output tiling (kh-1 input-row halo) for frames too
        # large to fit one (H, W) plane per Cout tile in VMEM (v7x 64 MiB).
        raise ValueError("per-step VMEM estimate exceeds budget; "
                         "H/W output tiling is not implemented")
    cout_t, n_j, hc, chunk_m, w_resident = chosen
    w_sliced = w_resident and n_j > 1
    n_chunks = h_out // hc

    kernel = functools.partial(_fold_kernel, hc=hc, n_chunks=n_chunks, w_r=w_r,
                               k_p=k_p, cout_t=cout_t, w_sliced=w_sliced)

    in_specs = [pl.BlockSpec((1, 1, h_out, w_r, k_p),
                             lambda b, t, j: (b, t, 0, 0, 0))]
    if w_resident:
        # Constant index map -> weight fetched once for the whole grid.
        in_specs.append(pl.BlockSpec((k_p, cout_p), lambda b, t, j: (0, 0)))
    else:
        in_specs.append(pl.BlockSpec((k_p, cout_t), lambda b, t, j: (0, j)))

    return pl.pallas_call(
        kernel,
        out_shape=jax.ShapeDtypeStruct((n, t_out, h_out, w_r, cout_p), out_dtype),
        grid=(n, t_out, n_j),
        in_specs=in_specs,
        out_specs=pl.BlockSpec((1, 1, h_out, w_r, cout_t),
                               lambda b, t, j: (b, t, 0, 0, j)),
        compiler_params=pltpu.CompilerParams(
            dimension_semantics=("parallel", "parallel", "arbitrary"),
            vmem_limit_bytes=vmem_limit),
    )(col, w2)


# ----------------------------------------------------------------------------
# TAP-path kernel (large Cin): one grid step = (batch, output frame, Cout tile).
#   refs = (x_tap_0..kt-1, w, o, acc_scratch)
#   x_tap_dt : (1, 1, H_pad, W_r, Cin_p)          input frame t+dt
#   w        : (kt, kh, kw, Cin_p, Cout_p|Cout_t) packed weight
#   o        : (1, 1, H_out, W_r, Cout_t)         output tile
#   acc      : (hc*W_r, Cout_t) f32 VMEM scratch  per-chunk accumulator
#
# Each H-row chunk: fori over dh (dynamic weight index), dt/dw unrolled; each
# dot's dw shift is applied with pltpu.roll (XLU) and accumulated into the
# VMEM scratch; the finished chunk is stored straight into o_ref.  The roll
# wrap-around only lands in junk columns (w >= w_valid), cropped in the
# wrapper (requires w_r >= w_valid + kw - 1, asserted there).
# ----------------------------------------------------------------------------
def _tap_kernel(*refs, kt, kh, kw, hc, n_chunks, w_r, cin_p, cout_t, w_sliced):
    x_refs = refs[:kt]
    w_ref = refs[kt]
    o_ref = refs[kt + 1]
    acc_ref = refs[kt + 2]
    chunk_m = hc * w_r
    col0 = pl.multiple_of(pl.program_id(2) * cout_t, cout_t) if w_sliced else 0

    def chunk_body(c, carry):
        row0 = c * hc
        acc_ref[...] = jnp.zeros_like(acc_ref)

        def dh_body(dh, inner):
            for dt in range(kt):                        # kt <= 3, selects tap ref
                lhs = x_refs[dt][0, 0, pl.ds(row0 + dh, hc), :, :].reshape(
                    chunk_m, cin_p)
                for dw in range(kw):                    # unrolled: static roll shift
                    if w_sliced:
                        rhs = w_ref[dt, dh, dw, :, pl.ds(col0, cout_t)]
                    else:
                        rhs = w_ref[dt, dh, dw]
                    d = jnp.dot(lhs, rhs, preferred_element_type=jnp.float32)
                    if dw:
                        # out[r] needs d[r + dw] -> roll by (chunk_m - dw).
                        d = pltpu.roll(d, shift=chunk_m - dw, axis=0)
                    acc_ref[...] += d
            return inner

        lax.fori_loop(0, kh, dh_body, 0)
        o_ref[0, 0, pl.ds(row0, hc), :, :] = (
            acc_ref[...].reshape(hc, w_r, cout_t).astype(o_ref.dtype))
        return carry

    lax.fori_loop(0, n_chunks, chunk_body, 0)


def _tap_pallas(x_pad, w_pack, *, t_out, h_out, out_dtype):
    n, t_in, h_pad, w_r, cin_p = x_pad.shape
    kt, kh, kw, cin_p_w, cout_p = w_pack.shape
    assert cin_p_w == cin_p
    assert t_in == t_out + kt - 1
    assert w_r % 8 == 0 and cin_p % 128 == 0 and cout_p % 128 == 0

    cout_tile, vmem_limit = _gen_params()
    isz = x_pad.dtype.itemsize
    osz = jnp.dtype(out_dtype).itemsize
    wsz = w_pack.dtype.itemsize

    chosen = None
    for cout_t in sorted({min(cout_tile, cout_p), 128}, reverse=True):
        if cout_p % cout_t:
            continue
        n_j = cout_p // cout_t
        hc = _choose_chunk_rows(h_out, w_r, target_rows=128)
        chunk_m = hc * w_r
        w_bytes_full = kt * kh * kw * cin_p * cout_p * wsz
        w_resident = 2 * w_bytes_full <= vmem_limit // 3
        w_block_bytes = (w_bytes_full if w_resident
                         else kt * kh * kw * cin_p * cout_t * wsz)
        est = (2 * kt * h_pad * w_r * cin_p * isz     # kt aliased frames (dbl buf)
               + 2 * w_block_bytes                    # weight
               + 2 * h_out * w_r * cout_t * osz       # output tile
               + chunk_m * cout_t * 4                 # f32 scratch accumulator
               + 3 * chunk_m * cout_t * 4             # dot/roll transients, spill slack
               + 2 * _MIB)                            # Mosaic internal scratch
        if est <= vmem_limit:
            chosen = (cout_t, n_j, hc, chunk_m, w_resident)
            break
    if chosen is None:
        # TODO(synk): add H-output tiling (kh-1 input-row halo via pl.Element or
        # manual DMA) for frames too large for one (H, W) plane per Cout tile.
        raise ValueError("per-step VMEM estimate exceeds budget; "
                         "H/W output tiling is not implemented")
    cout_t, n_j, hc, chunk_m, w_resident = chosen
    w_sliced = w_resident and n_j > 1
    n_chunks = h_out // hc

    kernel = functools.partial(
        _tap_kernel, kt=kt, kh=kh, kw=kw, hc=hc, n_chunks=n_chunks,
        w_r=w_r, cin_p=cin_p, cout_t=cout_t, w_sliced=w_sliced)

    # kt views of the same input array: tap dt reads frame t+dt.
    # TODO(synk): tile T (fetch TT+kt-1 frames per step) to cut the kt x input
    # read amplification on v5e; add pipeline_mode=pl.Buffered(3) if the
    # profile shows exposed frame DMA.
    in_specs = [
        pl.BlockSpec((1, 1, h_pad, w_r, cin_p),
                     lambda b, t, j, dt=dt: (b, t + dt, 0, 0, 0))
        for dt in range(kt)
    ]
    if w_resident:
        # Constant index map -> weight fetched once for the whole grid; the
        # kernel slices the Cout tile with pl.ds when n_j > 1.
        in_specs.append(pl.BlockSpec((kt, kh, kw, cin_p, cout_p),
                                     lambda b, t, j: (0, 0, 0, 0, 0)))
    else:
        in_specs.append(pl.BlockSpec((kt, kh, kw, cin_p, cout_t),
                                     lambda b, t, j: (0, 0, 0, 0, j)))

    return pl.pallas_call(
        kernel,
        out_shape=jax.ShapeDtypeStruct((n, t_out, h_out, w_r, cout_p), out_dtype),
        grid=(n, t_out, n_j),
        in_specs=in_specs,
        out_specs=pl.BlockSpec((1, 1, h_out, w_r, cout_t),
                               lambda b, t, j: (b, t, 0, 0, j)),
        scratch_shapes=[pltpu.VMEM((chunk_m, cout_t), jnp.float32)],
        compiler_params=pltpu.CompilerParams(
            dimension_semantics=("parallel", "parallel", "arbitrary"),
            vmem_limit_bytes=vmem_limit),
    )(*([x_pad] * kt), w_pack)


# ----------------------------------------------------------------------------
# MPConv3D wrapper (parameter setup + layout glue in plain JAX)
# ----------------------------------------------------------------------------
class MPConv3D:
    def __init__(self, in_channels, out_channels, kernel, groups=1, stride=1,
                 disable_weight_norm=False, norm_dim=1, out_gain_param=False,
                 use_bf16_mxu=True, *, key):
        assert groups == 1, "groups > 1 not implemented"   # TODO(synk): grouped conv path
        assert stride == 1, "stride > 1 not implemented"   # TODO(synk): strided conv path
        self.in_channels = in_channels
        self.out_channels = out_channels
        self.groups = groups
        self.stride = stride
        self.disable_weight_norm = disable_weight_norm
        self.norm_dim = norm_dim
        self.use_bf16_mxu = use_bf16_mxu
        # torch.randn(out_channels, in_channels // groups, *kernel)
        self.weight = jax.random.normal(
            key, (out_channels, in_channels // groups, *kernel), jnp.float32)
        self.out_gain = jnp.ones(()) if out_gain_param else None
        self.training = True  # nn.Module default

    def effective_weight(self, dtype=jnp.float32, gain=None):
        if self.out_gain is None:
            if gain is None:
                gain = 1.0
        else:
            gain = self.out_gain
        w = self.weight.astype(jnp.float32)
        if self.training and not self.disable_weight_norm:
            w = normalize(w, dim=self.norm_dim)
        w = w * (gain / (w[0].size ** 0.5))
        return w.astype(dtype)

    def __call__(self, x, gain=None):
        # x: NCDHW (N, C, T, H, W), like the PyTorch module.
        w = self.effective_weight(jnp.float32, gain)       # (Cout, Cin, kt, kh, kw)
        if w.ndim == 2:
            # TODO(synk): 2-D weight (plain matmul) path of the reference module.
            raise NotImplementedError("2-D weight path not implemented")
        if w.ndim == 4:
            # TODO(synk): conv2d path of the reference module.
            raise NotImplementedError("conv2d path not implemented")
        assert w.ndim == 5, "only the 5-D conv3d path is implemented"
        c_out, c_in, kt, kh, kw = w.shape
        n, c, t, h, wd = x.shape
        assert c == c_in

        compute_dtype = jnp.bfloat16 if self.use_bf16_mxu else x.dtype
        cout_tile, _ = _gen_params()
        cout_p = _round_up(c_out, cout_tile)

        # NCDHW -> NDHWC.
        # TODO(synk): keep activations NDHWC/bf16 end-to-end and fold the T/H/W
        # halos into the kernel (clamped index_maps + pl.when zero-fill) to cut
        # the wrapper-side HBM round trips (transpose / pad / crop).
        xl = jnp.transpose(x, (0, 2, 3, 4, 1))             # (N, T, H, W, C)

        # --- temporal handling (matches reference forward)
        if kt == 2:
            xl = jnp.concatenate([xl, xl[:, :1]], axis=1)  # circular-append frame 0
        elif kt == 3:
            xl = jnp.pad(xl, ((0, 0), (1, 1), (0, 0), (0, 0), (0, 0)))
        t_out = xl.shape[1] - kt + 1
        assert t_out >= 1

        ph, pw = kh // 2, kw // 2
        h_out = h + 2 * ph - kh + 1
        w_out = wd + 2 * pw - kw + 1

        if c_in * kt * kh * kw <= _FOLD_MAX_K:
            # ---- FOLD path: fold all taps into the MXU contraction (im2col).
            xp = jnp.pad(xl, ((0, 0), (0, 0), (ph, ph), (pw, pw), (0, 0)))
            cols = [xp[:, dt:dt + t_out, dh:dh + h_out, dw:dw + w_out, :]
                    for dt in range(kt) for dh in range(kh) for dw in range(kw)]
            col = jnp.concatenate(cols, axis=-1)           # (N,T_out,H_out,W_out,K)
            k_real = kt * kh * kw * c_in
            k_p = _round_up(k_real, 128)
            w_r = _round_up(max(w_out, 8), 8)
            col = jnp.pad(col, ((0, 0), (0, 0), (0, 0),
                                (0, w_r - w_out), (0, k_p - k_real)))
            col = col.astype(compute_dtype)
            w2 = jnp.transpose(w, (2, 3, 4, 1, 0)).reshape(k_real, c_out)
            w2 = jnp.pad(w2, ((0, k_p - k_real), (0, cout_p - c_out)))
            w2 = w2.astype(compute_dtype)
            out = _fold_pallas(col, w2, out_dtype=x.dtype)
        else:
            # ---- TAP path: per-tap matmuls, dw shift on the XLU (roll).
            w_same = wd + 2 * pw
            w_r = _round_up(max(w_same, 8), 8)
            # Roll wrap-around must land in junk (cropped) columns.
            assert w_r >= w_out + kw - 1
            cin_p = _round_up(c_in, 128)
            xp = jnp.pad(xl, ((0, 0), (0, 0), (ph, ph),
                              (pw, pw + (w_r - w_same)), (0, cin_p - c_in)))
            xp = xp.astype(compute_dtype)
            wk = jnp.transpose(w, (2, 3, 4, 1, 0))         # (kt, kh, kw, Cin, Cout)
            wk = jnp.pad(wk, ((0, 0), (0, 0), (0, 0),
                              (0, cin_p - c_in), (0, cout_p - c_out)))
            wk = wk.astype(compute_dtype)
            out = _tap_pallas(xp, wk, t_out=t_out, h_out=h_out, out_dtype=x.dtype)

        # (N, T_out, H_out, W_r, Cout_p) -> crop padding, back to NCDHW.
        # TODO(synk): emit bf16 directly when downstream layers accept it.
        out = out[:, :, :, :w_out, :c_out]
        return jnp.transpose(out, (0, 4, 1, 2, 3))


# ----------------------------------------------------------------------------
# Pure-JAX reference (sanity check only)
# ----------------------------------------------------------------------------
def conv3d_reference(x_ncdhw, w_oidhw):
    kt, kh, kw = w_oidhw.shape[2], w_oidhw.shape[3], w_oidhw.shape[4]
    if kt == 2:
        x_ncdhw = jnp.concatenate([x_ncdhw, x_ncdhw[:, :, :1]], axis=2)
        pad_t = (0, 0)
    elif kt == 3:
        pad_t = (1, 1)
    else:
        pad_t = (0, 0)
    return jax.lax.conv_general_dilated(
        x_ncdhw, w_oidhw, window_strides=(1, 1, 1),
        padding=(pad_t, (kh // 2, kh // 2), (kw // 2, kw // 2)),
        dimension_numbers=("NCDHW", "OIDHW", "NCDHW"),
        precision=jax.lax.Precision.HIGHEST)


if __name__ == "__main__":
    root = jax.random.PRNGKey(0)
    tests = [
        # (kernel,      C_in, C_out, N, T, H, W)
        ((3, 3, 3), 4, 8, 2, 4, 8, 8),     # folded-K path, kt=3 zero pad
        ((2, 3, 3), 4, 8, 2, 4, 8, 8),     # folded-K path, kt=2 circular append
        ((3, 3, 3), 48, 96, 1, 3, 8, 8),   # tap path (48*27 > fold threshold)
    ]
    for i, (ksz, cin, cout, n, t, h, w) in enumerate(tests):
        k_w, k_x = jax.random.split(jax.random.fold_in(root, i))
        conv = MPConv3D(cin, cout, ksz, key=k_w)
        x = jax.random.normal(k_x, (n, cin, t, h, w), jnp.float32)  # NCDHW

        y = jax.block_until_ready(conv(x))
        assert y.shape == (n, cout, t, h, w), (ksz, y.shape)

        # sanity check against XLA conv with the identical effective weight
        y_ref = conv3d_reference(x, conv.effective_weight(jnp.float32))
        err = float(jnp.max(jnp.abs(y - y_ref)))
        scale = float(jnp.max(jnp.abs(y_ref))) + 1e-6
        assert err <= 3e-2 * scale + 2e-2, (ksz, err, scale)

    print("KERNEL_OK")
</pallas_src>

<mosaic_0001>
module attributes {stable_mosaic.version = 11 : i64} {
  func.func @_fold_kernel(%arg0: i32, %arg1: i32, %arg2: i32, %arg3: memref<1x1x8x8x128xbf16, #tpu.memory_space<vmem>>, %arg4: memref<128x256xbf16, #tpu.memory_space<vmem>>, %arg5: memref<1x1x8x8x256xf32, #tpu.memory_space<vmem>>) attributes {dimension_semantics = [#tpu.dimension_semantics<parallel>, #tpu.dimension_semantics<parallel>, #tpu.dimension_semantics<arbitrary>], iteration_bounds = array<i64: 2, 4, 1>, scalar_prefetch = 0 : i64, scratch_operands = 0 : i64, tpu.core_type = #tpu.core_type<tc>, window_params = [{transform_indices = @transform_0, window_bounds = array<i64: 1, 1, 8, 8, 128>}, {pipeline_mode = #tpu.pipeline_mode<synchronous>, transform_indices = @transform_1, window_bounds = array<i64: 128, 256>}, {transform_indices = @transform_2, window_bounds = array<i64: 1, 1, 8, 8, 256>}]} {
    %c0 = arith.constant 0 : index
    %c0_0 = arith.constant 0 : index
    %0 = vector.load %arg4[%c0, %c0_0] : memref<128x256xbf16, #tpu.memory_space<vmem>>, vector<128x256xbf16>
    %c0_i32 = arith.constant 0 : i32
    %c8_i32 = arith.constant 8 : i32
    %1 = arith.muli %c0_i32, %c8_i32 : i32
    %c0_1 = arith.constant 0 : index
    %c0_2 = arith.constant 0 : index
    %2 = arith.index_cast %1 : i32 to index
    %c0_3 = arith.constant 0 : index
    %c0_4 = arith.constant 0 : index
    %3 = vector.load %arg3[%c0_1, %c0_2, %2, %c0_3, %c0_4] : memref<1x1x8x8x128xbf16, #tpu.memory_space<vmem>>, vector<1x1x8x8x128xbf16>
    %4 = vector.shape_cast %3 : vector<1x1x8x8x128xbf16> to vector<8x8x128xbf16>
    %5 = vector.shape_cast %4 : vector<8x8x128xbf16> to vector<64x128xbf16>
    %cst = arith.constant dense<0.000000e+00> : vector<64x256xf32>
    %6 = tpu.matmul %5, %0, %cst {dimension_numbers = #tpu.dot_dimension_numbers<[1], [0], [0], [1], [0, 0, 1, 1], [], []>} : vector<64x128xbf16>, vector<128x256xbf16>, vector<64x256xf32> -> vector<64x256xf32>
    %7 = vector.shape_cast %6 : vector<64x256xf32> to vector<8x8x256xf32>
    %c0_5 = arith.constant 0 : index
    %c0_6 = arith.constant 0 : index
    %8 = arith.index_cast %1 : i32 to index
    %c0_7 = arith.constant 0 : index
    %c0_8 = arith.constant 0 : index
    %9 = vector.load %arg5[%c0_5, %c0_6, %8, %c0_7, %c0_8] : memref<1x1x8x8x256xf32, #tpu.memory_space<vmem>>, vector<1x1x8x8x256xf32>
    %10 = vector.shape_cast %9 : vector<1x1x8x8x256xf32> to vector<8x8x256xf32>
    %11 = vector.shape_cast %7 : vector<8x8x256xf32> to vector<1x1x8x8x256xf32>
    tpu.vector_store %arg5[%c0_5, %c0_6, %8, %c0_7, %c0_8], %11 {strides = array<i32>} : memref<1x1x8x8x256xf32, #tpu.memory_space<vmem>>, vector<1x1x8x8x256xf32>,
    %c1_i32 = arith.constant 1 : i32
    return
  }
  func.func @transform_0(%arg0: i32, %arg1: i32, %arg2: i32) -> (i32, i32, i32, i32, i32) {
    %c0_i32 = arith.constant 0 : i32
    %c0_i32_0 = arith.constant 0 : i32
    %c0_i32_1 = arith.constant 0 : i32
    %c0_i32_2 = arith.constant 0 : i32
    return %arg0, %arg1, %c0_i32, %c0_i32_0, %c0_i32_1 : i32, i32, i32, i32, i32
  }
  func.func @transform_1(%arg0: i32, %arg1: i32, %arg2: i32) -> (i32, i32) {
    %c0_i32 = arith.constant 0 : i32
    %c0_i32_0 = arith.constant 0 : i32
    %c0_i32_1 = arith.constant 0 : i32
    return %c0_i32, %c0_i32_0 : i32, i32
  }
  func.func @transform_2(%arg0: i32, %arg1: i32, %arg2: i32) -> (i32, i32, i32, i32, i32) {
    %c0_i32 = arith.constant 0 : i32
    %c0_i32_0 = arith.constant 0 : i32
    %c0_i32_1 = arith.constant 0 : i32
    return %arg0, %arg1, %c0_i32, %c0_i32_0, %arg2 : i32, i32, i32, i32, i32
  }
}

</mosaic_0001>

<bundles_post_ra>
// kernel: tpu_custom_call.1
= control target key start
LH: loop header
LB: loop body
LE: loop exit
PB: predicated region body
PF: predicated region fallthrough
CT: control target
= control target key end

     0   :  { %s1181_s0 = inlined_call_operand.hbm [shape: bf16[2,4,8,8,128], index: 0, kind: input, shape index: {}]   ;;  %s1182_s1 = inlined_call_operand.hbm [shape: bf16[128,256], index: 1, kind: input, shape index: {}]   ;;  %s1183_s2 = inlined_call_operand.hbm [shape: f32[2,4,8,8,256], index: 2, kind: output, shape index: {}]  }
   0x1   :  { %1191 = sst [smem:[#allocation14_spill]] %s1182_s1 }
   0x2   :  { %7 = vsyncpa [#allocation3], 0 }
   0x3   :  { %9 = vsyncpa [#allocation3 + $0x1], 0 }
   0x4   :  { %10 = vsyncpa [#allocation6], 0 }
   0x5   :  { %11 = vsyncpa [#allocation4], 0 }
   0x6   :  { %13 = vsyncpa [#allocation4 + $0x1], 0  ;;  %s912_s9 = smov 0   ;;  %s914_s10 = smov 0  }
   0x7   :  { %s916_s11 = smov 0   ;;  %s918_s12 = smov 0  }
   0x8   :  { %s920_s13 = smov 0   ;;  %s922_s14 = smov 0  }
   0x9   :  { %s924_s15 = smov 0   ;;  %s926_s16 = smov 0  }
   0xa LB: > { %1192 = sst [smem:[#allocation11_spill]] %s877_s14  ;;  %s546_s17 = sadd.s32 4294967295, %s885_s16   ;;  %s885_s16 = sphi %s926_s16, %s19_s16   ;;  %s881_s15 = sphi %s924_s15, %s1217_s15   ;;  %s877_s14 = sphi %s922_s14, %s1211_s14   ;;  %s873_s13 = sphi %s920_s13, %s1216_s13   ;;  %s869_s12 = sphi %s918_s12, %s1210_s12   ;;  %s865_s11 = sphi %s916_s11, %s1215_s11   ;;  %s861_s10 = sphi %s914_s10, %s1214_s10   ;;  %s857_s9 = sphi %s912_s9, %s1213_s9  }
   0xb   : > { %s547_s18 = sadd.s32 4294967294, %s885_s16   ;;  %p60_p0 = scmp.ne.s32.totalorder %s861_s10, %s857_s9 }
   0xc   : > { %p956_p1 = scmp.eq.s32.totalorder %s546_s17, 0  ;;  %p960_p2 = scmp.eq.s32.totalorder %s546_s17, 7 }
   0xd   : > { %p115_p3 = scmp.eq.s32.totalorder %s547_s18, 7  ;;  %p548_p5 = scmp.ge.s32.totalorder %s885_s16, 1 }
   0xe   : > { %s1193_s19 = scalar_select %p956_p1, 1, 0 }
   0xf   : > { %s1194_s20 = scalar_select %p960_p2, 1, 0 }
  0x10   : > { %p966_p4 = por %p956_p1, %p60_p0  ;;  %p971_p6 = por %p115_p3, %p60_p0 }
  0x11   : > { %p122_p7 = scmp.lt.s32.totalorder %s885_s16, 9  ;;  %s887_s24 = smov [#allocation5]  }
  0x12   : > { %s1195_s21 = scalar_select %p966_p4, 1, 0 }
  0x13   : > { %s1196_s22 = scalar_select %p971_p6, 1, 0 }
  0x14   : > { %p976_p8 = pnand %p548_p5, %p122_p7  ;;  %s134_s25 = sshll.u32 %s887_s24, 4  ;;  %s135_s25 = int_to_ptr.vmem [resolvable:$true] %s134_s25 }
  0x15   : > { %s1199_s1 = sld [smem:[#allocation14_spill]] }
  0x16   : > { %s1197_s23 = scalar_select %p976_p8, 1, 0 }
  0x17   : > { %p609_p9 = pneg %p976_p8 }
  0x19   : > { %p984_p10 = pnand %p609_p9, %p956_p1 }
  0x1b   : > { %s725_s29 = scalar_lea.hbm %s1199_s1, 2048  ;;  %p727_p12 = pneg %p984_p10 }
  0x1c   : > { %p726_p11 = scmp.ne.s32.totalorder %s1199_s1, %s725_s29  ;;  %p732_p3 = scmp.lt.u32.totalorder %s725_s29, %s1199_s1 }
  0x1e   : > { %p728_p13 = pnand %p727_p12, %p726_p11 }
  0x20   : > { %p729_p0 = pneg %p728_p13 }
  0x22   : > { %p734_p5 = pnand %p732_p3, %p729_p0 }
  0x24   : > { %737 = shalt.err (!%p734_p5)
}
  0x25   : > { %s738_s6 = scalar_lea.vmem %s135_s25, 2048  ;;  %p746_p1 = scmp.lt.s32.totalorder %s135_s25, %s135_s25 }
  0x26   : > { %p739_p7 = scmp.ne.s32.totalorder %s135_s25, %s738_s6  ;;  %p747_p4 = scmp.lt.s32.totalorder %s738_s6, %s738_s6 }
  0x28   : > { %p741_p9 = pnand %p739_p7, %p727_p12  ;;  %p748_p8 = por %p747_p4, %p746_p1 }
  0x2a   : > { %p742_p6 = pneg %p741_p9 }
  0x2c   : > { %p749_p2 = pnand %p748_p8, %p742_p6 }
  0x2e   : > { %752 = shalt.err (!%p749_p2)
}
  0x2f   : > { %s888_s7 = smov 128   ;;  %s889_s8 = smov 8  }
  0x30   : > { %612 = dma.hbm_to_vmem [thread:$0]  (!%p984_p10), %s1199_s1, 2048, %s135_s25, [#allocation6], %s888_s7, %s888_s7, %s889_s8  }
  0x31   : > { %s34_s24 = sadd.s32 1, %s877_s14  ;;  %s38_s27 = sadd.s32 1, %s881_s15 }
  0x32   : > { %p36_p1 = scmp.ge.s32.totalorder %s34_s24, 4  ;;  %s47_s28 = sadd.s32 1, %s865_s11 }
  0x33   : > { %p54_p2 = scmp.ne.s32.totalorder %s865_s11, %s861_s10  ;;  %p55_p4 = scmp.eq.s32.totalorder %s885_s16, 0 }
  0x34   : > { %s1219_s24 = smov (%p36_p1, %s34_s24), 0  ;;  %s1221_s27 = smov (!%p36_p1, %s38_s27), %s881_s15 }
  0x35   : > { %1200 = sst [smem:[#allocation12_spill]] %s1219_s24  ;;  %s43_s29 = ssub.s32 %s877_s14, %s1219_s24 }
  0x36   : > { %p40_p6 = scmp.ge.s32.totalorder %s1221_s27, 2  ;;  %p1201_p8 = scmp.ne.s32.totalorder %s1194_s20, 0 }
  0x37   : > { %p1021_p10 = por %p55_p4, %p54_p2  ;;  %p622_p12 = scmp.lt.s32.totalorder %s885_s16, 8 }
  0x38   : > { %p1017_p11 = por %p1201_p8, %p54_p2  ;;  %s1223_s27 = smov (%p40_p6, %s1221_s27), 0 }
  0x39   : > { %1204 = sst [smem:[#allocation13_spill]] %s1223_s27  ;;  %s148_s30 = sand.u32 1, %s865_s11  }
  0x3a   : > { %s552_s3 = sshll.u32 %s877_s14, 3  ;;  %s42_s4 = ssub.s32 %s881_s15, %s1223_s27 }
  0x3b   : > { %s44_s5 = sor.u32 %s43_s29, %s42_s4  ;;  %s551_s6 = sshll.u32 %s148_s30, 5 }
  0x3c   : > { %p45_p13 = scmp.eq.s32.totalorder %s44_s5, 0  ;;  %s553_s20 = sshll.u32 %s881_s15, 5 }
  0x3d   : > { %s152_s7 = scalar_lea.vmem [#allocation2], %s551_s6  ;;  %s158_s18 = sadd.s32 %s553_s20, %s552_s3 }
  0x3e   : > { %s161_s8 = sshll.u32 %s152_s7, 4  ;;  %s554_s1 = sshll.u32 %s158_s18, 6  ;;  %s1036_s8 = int_to_ptr.vmem [resolvable:$true] %s161_s8 }
  0x3f   : > { %s1034_s17 = scalar_select %p45_p13, %s865_s11, %s47_s28  }
  0x40   : > { %p1042_p0 = pnand %p622_p12, %p1021_p10  ;;  %s1049_s29 = scalar_lea.hbm %s1181_s0, %s554_s1 }
  0x41   : > { %s1051_s28 = scalar_lea.sflag [#allocation3], %s148_s30  ;;  %s753_s3 = scalar_lea.hbm %s1049_s29, 512 }
  0x42   : > { %p754_p3 = scmp.ne.s32.totalorder %s1049_s29, %s753_s3  ;;  %p755_p5 = pneg %p1042_p0 }
  0x43   : > { %s758_s27 = scalar_lea.hbm %s1181_s0, 4096  ;;  %p759_p1 = scmp.lt.u32.totalorder %s1049_s29, %s1181_s0 }
  0x44   : > { %p756_p7 = pnand %p755_p5, %p754_p3  ;;  %p760_p2 = scmp.lt.u32.totalorder %s758_s27, %s753_s3 }
  0x45   : > { %p762_p6 = scmp.lt.u32.totalorder %s753_s3, %s1049_s29 }
  0x46   : > { %p757_p9 = pneg %p756_p7  ;;  %p761_p4 = por %p760_p2, %p759_p1 }
  0x48   : > { %p763_p8 = por %p762_p6, %p761_p4 }
  0x4a   : > { %p764_p10 = pnand %p763_p8, %p757_p9 }
  0x4c   : > { %767 = shalt.err (!%p764_p10)
}
  0x4d   : > { %s768_s30 = scalar_lea.vmem %s1036_s8, 512  ;;  %s890_s5 = smov [#allocation2]  }
  0x4e   : > { %p769_p12 = scmp.ne.s32.totalorder %s1036_s8, %s768_s30  ;;  %s773_s6 = sshll.u32 %s890_s5, 4  ;;  %s774_s6 = int_to_ptr.vmem [resolvable:$false] %s773_s6 }
  0x4f   : > { %s775_s20 = scalar_lea.vmem %s774_s6, 1024  ;;  %p776_p7 = scmp.lt.s32.totalorder %s1036_s8, %s774_s6 }
  0x50   : > { %p771_p13 = pnand %p769_p12, %p755_p5  ;;  %p777_p1 = scmp.lt.s32.totalorder %s775_s20, %s768_s30 }
  0x52   : > { %p772_p3 = pneg %p771_p13  ;;  %p778_p2 = por %p777_p1, %p776_p7 }
  0x54   : > { %p779_p4 = pnand %p778_p2, %p772_p3 }
  0x56   : > { %782 = shalt.err (!%p779_p4)
}
  0x57   : > { %s891_s7 = smov 64   ;;  %s892_s18 = smov 4  }
  0x58   : > { %616 = dma.hbm_to_vmem [thread:$0]  (!%p1042_p0), %s1049_s29, 512, %s1036_s8, %s1051_s28, %s891_s7, %s891_s7, %s892_s18  }
  0x59   : > { %p1206_p5 = scmp.ne.s32.totalorder %s1197_s23, 0 }
  0x5a   : > { %s1082_s3 = sand.u32 (!%p1206_p5), 1, %s861_s10   ;;  %p1207_p9 = scmp.ne.s32.totalorder (!%p1206_p5), %s1195_s21, 0 }
  0x5b   : > { %173 = sbr.rel (%p1206_p5) target bundleno = 374 (0x176), region = 28  ;;  %s556_s25 = sshll.u32 (!%p1206_p5), %s1082_s3, 5 }
  0x5c   : > { %s176_s14 = scalar_lea.sflag (!%p1206_p5), [#allocation3], %s1082_s3  ;;  %s1086_s27 = scalar_lea.vmem (!%p1206_p5), [#allocation2], %s556_s25 }
  0x62   : > { %844 = dma.done.wait (%p1207_p9), %s176_s14, 512  }
  0x63   : > { %846 = vsyncadd (%p1207_p9), %s176_s14, 4294966784  ;;  %p1208_p0 = scmp.ne.s32.totalorder %s1193_s19, 0 }
  0x65   : > { %848 = dma.done.wait (%p1208_p0), [#allocation6], 2048  }
  0x66   : > { %850 = vsyncadd (%p1208_p0), [#allocation6], 4294965248  ;;  %v893_v0 = vmov 0   ;;  %v697_v1 = vld [vmem:[#allocation5 + $0x4] ss:$8 sps:$4 sm:$0xff]   ;;  %v722_v18 = vld [vmem:[%s1086_s27 + $0x10] sm:$0xff]  }
  0x67   : > { %366 = vmatprep.mubr.bf16.mxu0 %v893_v0  ;;  %386 = vmatprep.mubr.bf16.mxu1 %v893_v0  ;;  %v699_v2 = vld [vmem:[#allocation5] ss:$8 sps:$4 sm:$0xff]   ;;  %v700_v3 = vld [vmem:[#allocation5 + $0x14] ss:$8 sps:$4 sm:$0xff]   ;;  %v702_v4 = vld [vmem:[#allocation5 + $0x10] ss:$8 sps:$4 sm:$0xff]  }
  0x68   : > { %334 = vmatprep.subr.bf16.mxu0 %v697_v1  ;;  %585 = vmatprep.subr.bf16.mxu1 %v697_v1  ;;  %v703_v5 = vld [vmem:[#allocation5 + $0x24] ss:$8 sps:$4 sm:$0xff]   ;;  %v705_v6 = vld [vmem:[#allocation5 + $0x20] ss:$8 sps:$4 sm:$0xff]   ;;  %v706_v7 = vld [vmem:[#allocation5 + $0x34] ss:$8 sps:$4 sm:$0xff]  }
  0x69   : > { %335 = vmatpush1.bf16.msra.mxu0 %v699_v2  ;;  %593 = vmatpush1.bf16.msra.mxu1 %v699_v2  ;;  %v708_v8 = vld [vmem:[#allocation5 + $0x30] ss:$8 sps:$4 sm:$0xff]   ;;  %v709_v9 = vld [vmem:[#allocation5 + $0x44] ss:$8 sps:$4 sm:$0xff]   ;;  %v711_v10 = vld [vmem:[#allocation5 + $0x40] ss:$8 sps:$4 sm:$0xff]  }
  0x6a   : > { %336 = vmatprep.subr.bf16.mxu0 %v700_v3  ;;  %586 = vmatprep.subr.bf16.mxu1 %v700_v3  ;;  %v712_v11 = vld [vmem:[#allocation5 + $0x54] ss:$8 sps:$4 sm:$0xff]   ;;  %v714_v12 = vld [vmem:[#allocation5 + $0x50] ss:$8 sps:$4 sm:$0xff]   ;;  %v715_v13 = vld [vmem:[#allocation5 + $0x64] ss:$8 sps:$4 sm:$0xff]  }
  0x6b   : > { %v717_v14 = vld [vmem:[#allocation5 + $0x60] ss:$8 sps:$4 sm:$0xff]   ;;  %v718_v15 = vld [vmem:[#allocation5 + $0x74] ss:$8 sps:$4 sm:$0xff]   ;;  %v720_v16 = vld [vmem:[#allocation5 + $0x70] ss:$8 sps:$4 sm:$0xff]  }
  0x6c   : > { %v721_v17 = vld [vmem:[%s1086_s27] sm:$0xff]   ;;  %v723_v19 = vld [vmem:[%s1086_s27 + $0x8] sm:$0xff]   ;;  %v724_v20 = vld [vmem:[%s1086_s27 + $0x18] sm:$0xff]   ;;  %s558_s19 = sshll.u32 %s1082_s3, 7  ;;  %s580_s21 = sshll.u32 %s869_s12, 4 }
  0x6d   : > { %337 = vmatpush1.bf16.msra.mxu0 %v702_v4  ;;  %594 = vmatpush1.bf16.msra.mxu1 %v702_v4  ;;  %s581_s23 = sshll.u32 %s873_s13, 6  ;;  %s1103_s24 = scalar_lea.vmem [#allocation7], %s558_s19 }
  0x6e   : > { %338 = vmatprep.subr.bf16.mxu0 %v703_v5  ;;  %587 = vmatprep.subr.bf16.mxu1 %v703_v5  ;;  %s438_s12 = sadd.s32 %s581_s23, %s580_s21  ;;  %s441_s8 = sshll.u32 %s1103_s24, 4  ;;  %s1121_s8 = int_to_ptr.vmem [resolvable:$true] %s441_s8 }
  0x6f   : > { %s582_s13 = sshll.u32 %s438_s12, 7  ;;  %s424_s4 = scalar_lea.sflag [#allocation4], %s1082_s3 }
  0x70   : > { %s1119_s1 = scalar_lea.hbm %s1183_s2, %s582_s13  ;;  %s783_s30 = scalar_lea.vmem %s1121_s8, 2048 }
  0x71   : > { %339 = vmatpush1.bf16.msra.mxu0 %v705_v6  ;;  %595 = vmatpush1.bf16.msra.mxu1 %v705_v6  ;;  %p784_p6 = scmp.ne.s32.totalorder %s1121_s8, %s783_s30  ;;  %s894_s5 = smov [#allocation7]  }
  0x72   : > { %340 = vmatprep.subr.bf16.mxu0 %v706_v7  ;;  %588 = vmatprep.subr.bf16.mxu1 %v706_v7  ;;  %s787_s6 = sshll.u32 %s894_s5, 4  ;;  %s788_s6 = int_to_ptr.vmem [resolvable:$false] %s787_s6 }
  0x73   : > { %p785_p8 = pnand %p784_p6, %p1017_p11  ;;  %s789_s20 = scalar_lea.vmem %s788_s6, 4096 }
  0x74   : > { %p790_p12 = scmp.lt.s32.totalorder %s1121_s8, %s788_s6  ;;  %p791_p13 = scmp.lt.s32.totalorder %s789_s20, %s783_s30 }
  0x75   : > { %341 = vmatpush1.bf16.msra.mxu0 %v708_v8  ;;  %596 = vmatpush1.bf16.msra.mxu1 %v708_v8  ;;  %p786_p10 = pneg %p785_p8 }
  0x76   : > { %342 = vmatprep.subr.bf16.mxu0 %v709_v9  ;;  %589 = vmatprep.subr.bf16.mxu1 %v709_v9  ;;  %p792_p3 = por %p791_p13, %p790_p12 }
  0x78   : > { %p793_p7 = pnand %p792_p3, %p786_p10 }
  0x79   : > { %343 = vmatpush1.bf16.msra.mxu0 %v711_v10  ;;  %597 = vmatpush1.bf16.msra.mxu1 %v711_v10 }
  0x7a   : > { %344 = vmatprep.subr.bf16.mxu0 %v712_v11  ;;  %590 = vmatprep.subr.bf16.mxu1 %v712_v11 }
  0x7d   : > { %345 = vmatpush1.bf16.msra.mxu0 %v714_v12  ;;  %598 = vmatpush1.bf16.msra.mxu1 %v714_v12 }
  0x7e   : > { %346 = vmatprep.subr.bf16.mxu0 %v715_v13  ;;  %591 = vmatprep.subr.bf16.mxu1 %v715_v13 }
  0x81   : > { %347 = vmatpush1.bf16.msra.mxu0 %v717_v14  ;;  %599 = vmatpush1.bf16.msra.mxu1 %v717_v14 }
  0x82   : > { %348 = vmatprep.subr.bf16.mxu0 %v718_v15  ;;  %592 = vmatprep.subr.bf16.mxu1 %v718_v15 }
  0x85   : > { %349 = vmatpush1.bf16.msra.mxu0 %v720_v16  ;;  %600 = vmatpush1.bf16.msra.mxu1 %v720_v16 }
  0x88   : > { %367 = vmatmul.mubr.bf16.vlgmr.msra.gmra.mrb[0].mxu0 %v721_v17  ;;  %387 = vmatmul.mubr.bf16.vlgmr.msra.gmra.mrb[0].mxu1 %v722_v18 }
  0x89   : > { %376 = vmatprep.mubr.bf16.mxu0 %v893_v0  ;;  %396 = vmatprep.mubr.bf16.mxu1 %v893_v0 }
  0x90   : > { %377 = vmatmul.mubr.bf16.gmra.mrb[4].mxu0 %v723_v19  ;;  %397 = vmatmul.mubr.bf16.gmra.mrb[4].mxu1 %v724_v20 }
 0x15b   : > { %v368_v21 = vpop.f32.mrb[0].mxu0  ;;  %v388_v22 = vpop.f32.mrb[0].mxu1 }
 0x15c   : > { %407 = vst [vmem:[%s1103_s24] sm:$0xff] %v368_v21  ;;  %415 = vst [vmem:[%s1103_s24 + $0x40] sm:$0xff] %v388_v22  ;;  %v370_v23 = vpop.f32.mrb[1].mxu0  ;;  %v390_v24 = vpop.f32.mrb[1].mxu1 }
 0x15d   : > { %408 = vst [vmem:[%s1103_s24 + $0x8] sm:$0xff] %v370_v23  ;;  %416 = vst [vmem:[%s1103_s24 + $0x48] sm:$0xff] %v390_v24  ;;  %v372_v25 = vpop.f32.mrb[2].mxu0  ;;  %v392_v26 = vpop.f32.mrb[2].mxu1 }
 0x15e   : > { %409 = vst [vmem:[%s1103_s24 + $0x10] sm:$0xff] %v372_v25  ;;  %417 = vst [vmem:[%s1103_s24 + $0x50] sm:$0xff] %v392_v26  ;;  %v374_v27 = vpop.f32.mrb[3].mxu0  ;;  %v394_v28 = vpop.f32.mrb[3].mxu1 }
 0x15f   : > { %410 = vst [vmem:[%s1103_s24 + $0x18] sm:$0xff] %v374_v27  ;;  %418 = vst [vmem:[%s1103_s24 + $0x58] sm:$0xff] %v394_v28 }
 0x163   : > { %v378_v29 = vpop.f32.mrb[4].mxu0  ;;  %v398_v30 = vpop.f32.mrb[4].mxu1 }
 0x164   : > { %411 = vst [vmem:[%s1103_s24 + $0x20] sm:$0xff] %v378_v29  ;;  %419 = vst [vmem:[%s1103_s24 + $0x60] sm:$0xff] %v398_v30  ;;  %v380_v31 = vpop.f32.mrb[5].mxu0  ;;  %v400_v32 = vpop.f32.mrb[5].mxu1 }
 0x165   : > { %412 = vst [vmem:[%s1103_s24 + $0x28] sm:$0xff] %v380_v31  ;;  %420 = vst [vmem:[%s1103_s24 + $0x68] sm:$0xff] %v400_v32  ;;  %v382_v33 = vpop.f32.mrb[6].mxu0  ;;  %v402_v34 = vpop.f32.mrb[6].mxu1 }
 0x166   : > { %413 = vst [vmem:[%s1103_s24 + $0x30] sm:$0xff] %v382_v33  ;;  %421 = vst [vmem:[%s1103_s24 + $0x70] sm:$0xff] %v402_v34  ;;  %v384_v35 = vpop.f32.mrb[7].mxu0  ;;  %v404_v36 = vpop.f32.mrb[7].mxu1 }
 0x167   : > { %414 = vst [vmem:[%s1103_s24 + $0x38] sm:$0xff] %v384_v35  ;;  %422 = vst [vmem:[%s1103_s24 + $0x78] sm:$0xff] %v404_v36 }
 0x168   : > { %796 = shalt.err (!%p793_p7)
}
 0x169   : > { %s797_s7 = scalar_lea.hbm %s1119_s1, 2048  ;;  %s801_s14 = scalar_lea.hbm %s1183_s2, 16384 }
 0x16a   : > { %p798_p1 = scmp.ne.s32.totalorder %s1119_s1, %s797_s7  ;;  %p802_p5 = scmp.lt.u32.totalorder %s1119_s1, %s1183_s2 }
 0x16b   : > { %p803_p9 = scmp.lt.u32.totalorder %s801_s14, %s797_s7  ;;  %p805_p6 = scmp.lt.u32.totalorder %s797_s7, %s1119_s1 }
 0x16c   : > { %p799_p2 = pnand %p798_p1, %p1017_p11 }
 0x16d   : > { %p804_p0 = por %p803_p9, %p802_p5 }
 0x16e   : > { %p800_p4 = pneg %p799_p2 }
 0x16f   : > { %p806_p8 = por %p805_p6, %p804_p0 }
 0x171   : > { %p807_p10 = pnand %p806_p8, %p800_p4 }
 0x173   : > { %810 = shalt.err (!%p807_p10)
}
 0x174   : > { %s895_s21 = smov 256   ;;  %s896_s23 = smov 16  }
 0x175   : > { %607 = dma.vmem_to_hbm [thread:$0]  (%p1017_p11), %s1121_s8, 2048, %s1119_s1, %s424_s4, %s895_s21, %s895_s21, %s896_s23  }
 0x176 PF: > { %p624_p12 = scmp.ge.s32.totalorder %s885_s16, 2  ;;  %s456_s24 = sand.u32 1, %s857_s9  }
 0x177   : > { %p1209_p13 = scmp.ne.s32.totalorder %s1196_s22, 0  ;;  %s457_s12 = scalar_lea.sflag [#allocation4], %s456_s24 }
 0x179   : > { %p618_p3 = pnand %p624_p12, %p1209_p13 }
 0x17b   : > { %852 = dma.done.wait (!%p618_p3), %s457_s12, 2048  }
 0x17c   : > { %854 = vsyncadd (!%p618_p3), %s457_s12, 4294965248  ;;  %s19_s16 = sadd.s32 1, %s885_s16   ;;  %s1210_s12 = sld [smem:[#allocation11_spill]] }
 0x17d   : > { %p16_p7 = scmp.ge.s32.totalorder %s19_s16, 10   ;;  %s1211_s14 = sld [smem:[#allocation12_spill]] }
 0x17e   : > { %s1212_s26 = sld [smem:[#allocation13_spill]]  ;;  %s1213_s9 = smov %s861_s10 }
 0x17f   : > { %s1214_s10 = smov %s865_s11  ;;  %s1215_s11 = smov %s1034_s17 }
 0x180   : > { %s1216_s13 = smov %s881_s15  ;;  %18 = sbr.rel (!%p16_p7) target bundleno = 10 (0xa), region = 77 }
 0x184   : > { %s1217_s15 = smov %s1212_s26 }
 0x187   :  { %462 = vsyncpa [#allocation3], 1 }
 0x188   :  { %464 = vsyncpa [#allocation3 + $0x1], 1 }
 0x189   :  { %465 = vsyncpa [#allocation6], 1 }
 0x18a   :  { %466 = vsyncpa [#allocation4], 1 }
 0x18b   :  { %468 = vsyncpa [#allocation4 + $0x1], 1 }

</bundles_post_ra>
